<compile_context>
chip_gen: v6e
topology: v6e:2x2x1
jax: 0.10.0
libtpu: 0.0.40
codegen_flags: <defaults>
</compile_context>

<pallas_src>
import functools
import math

import jax
import jax.numpy as jnp
from jax.experimental import pallas as pl
from jax.experimental.pallas import tpu as pltpu

LN_EPS = 1e-5  # nn.LayerNorm default


def _layer_norm(x, w, b):
    mu = jnp.mean(x, axis=-1, keepdims=True)
    var = jnp.mean((x - mu) ** 2, axis=-1, keepdims=True)
    return (x - mu) * jax.lax.rsqrt(var + LN_EPS) * w + b


# --------------------------------------------------------------------------- #
# Kernel A: all encoder layers, activations resident in VMEM across layers.   #
# --------------------------------------------------------------------------- #
def encoder_layers_kernel(x0_ref, wqkv_ref, wo_ref, w1_ref, w2_ref, vec_ref,
                          x_out_ref, x_scratch, ctx_scratch, *, num_heads):
    layer = pl.program_id(1)

    # Load this sequence's embeddings into the resident activation buffer once.
    @pl.when(layer == 0)
    def _():
        x_scratch[...] = x0_ref[...].astype(jnp.float32)

    x = x_scratch[...]                       # (S, E) f32, resident across layers
    S, E = x.shape
    H = num_heads
    dh = E // H

    # Packed per-layer vectors: one (8, 4E) DMA instead of 12 tiny ones.
    vecs = vec_ref[...]                      # (8, 4E) f32
    bqkv = vecs[0:1, :3 * E]
    bo = vecs[1:2, :E]
    ln1w = vecs[2:3, :E]
    ln1b = vecs[3:4, :E]
    b1 = vecs[4:5, :]                        # (1, 4E)
    b2 = vecs[5:6, :E]
    ln2w = vecs[6:7, :E]
    ln2b = vecs[7:8, :E]

    # --- Multi-head self-attention (per-sequence -> no mask needed) ----------
    qkv = jnp.dot(x.astype(jnp.bfloat16), wqkv_ref[...],
                  preferred_element_type=jnp.float32) + bqkv      # (S, 3E) f32
    qkv_b = qkv.astype(jnp.bfloat16)         # single cast, hoisted out of head loop

    for h in range(H):                       # static unroll, static lane slices
        c = h * dh
        qh = qkv_b[:, c:c + dh]              # 1/sqrt(dh) folded into wqkv at init
        kh = qkv_b[:, E + c:E + c + dh]
        vh = qkv_b[:, 2 * E + c:2 * E + c + dh]
        # q @ k^T via dot_general dimension_numbers (no explicit transpose).
        s = jax.lax.dot_general(qh, kh, (((1,), (1,)), ((), ())),
                                preferred_element_type=jnp.float32)  # (S, S)
        s = s - jnp.max(s, axis=-1, keepdims=True)                   # f32 softmax
        p = jnp.exp(s)
        inv = pl.reciprocal(jnp.sum(p, axis=-1, keepdims=True), approx=True)
        p = (p * inv).astype(jnp.bfloat16)
        # Write this head's context at its static lane offset (no concatenate).
        ctx_scratch[:, c:c + dh] = jnp.dot(p, vh,
                                           preferred_element_type=jnp.float32)

    attn = jnp.dot(ctx_scratch[...].astype(jnp.bfloat16), wo_ref[...],
                   preferred_element_type=jnp.float32) + bo

    # --- Add & Norm 1 ---------------------------------------------------------
    x1 = _layer_norm(x + attn, ln1w, ln1b)

    # --- Feed-forward (ReLU) --------------------------------------------------
    # NOTE: for large E on v7x (64 MiB VMEM), tile the 4E FFN dim with an extra
    # grid axis / emit_pipeline so only (E, tk)/(tk, E) weight slices are resident.
    hdn = jnp.maximum(jnp.dot(x1.astype(jnp.bfloat16), w1_ref[...],
                              preferred_element_type=jnp.float32) + b1, 0.0)
    ff = jnp.dot(hdn.astype(jnp.bfloat16), w2_ref[...],
                 preferred_element_type=jnp.float32) + b2

    # --- Add & Norm 2 ---------------------------------------------------------
    x2 = _layer_norm(x1 + ff, ln2w, ln2b)
    x_scratch[...] = x2

    # Write the final hidden states to HBM only on the last layer step.
    @pl.when(layer == pl.num_programs(1) - 1)
    def _():
        x_out_ref[...] = x2.astype(x_out_ref.dtype)


# --------------------------------------------------------------------------- #
# Kernel B: final LayerNorm + LM head, tiled over (M rows, Vp vocab lanes).    #
# --------------------------------------------------------------------------- #
def head_kernel(x_ref, lnfw_ref, lnfb_ref, wh_ref, bh_ref, out_ref):
    xf = _layer_norm(x_ref[...].astype(jnp.float32), lnfw_ref[...], lnfb_ref[...])
    logits = jnp.dot(xf.astype(wh_ref.dtype), wh_ref[...],
                     preferred_element_type=jnp.float32) + bh_ref[...]
    out_ref[...] = logits.astype(out_ref.dtype)     # lane-dense bf16 store


# --------------------------------------------------------------------------- #
# Wrapper                                                                      #
# --------------------------------------------------------------------------- #
def _vmem_cap_bytes():
    try:
        return int(0.9 * pltpu.get_tpu_info().vmem_capacity_bytes)
    except Exception:
        return 64 * 1024 * 1024


def mini_transformer_forward(input_ids, params, num_heads):
    B, S = input_ids.shape
    E = params["tok_emb"].shape[1]
    L = params["wqkv"].shape[0]
    V = params["vocab_size"]
    Vp = params["wh_t"].shape[1]
    M = B * S

    # Embedding gathers are plain-JAX glue (no Pallas win at this granularity).
    x0 = (params["tok_emb"][input_ids]
          + params["pos_emb"][jnp.arange(S)][None, :, :]).astype(jnp.float32)  # (B,S,E)

    cap = _vmem_cap_bytes()

    # ---- Kernel A: stacked encoder layers -----------------------------------
    w_bytes = (3 * E * E + E * E + 4 * E * E + 4 * E * E) * 2 + 8 * 4 * E * 4
    io_bytes = 2 * S * E * 4
    est_a = 2 * (w_bytes + io_bytes) + 2 * S * E * 4       # double-buffer + scratch
    vmem_a = int(min(max(2 * est_a, 32 << 20), cap))

    hidden = pl.pallas_call(
        functools.partial(encoder_layers_kernel, num_heads=num_heads),
        out_shape=jax.ShapeDtypeStruct((B, S, E), jnp.float32),
        grid=(B, L),
        in_specs=[
            pl.BlockSpec((None, S, E), lambda b, l: (b, 0, 0)),       # x0
            pl.BlockSpec((None, E, 3 * E), lambda b, l: (l, 0, 0)),   # wqkv
            pl.BlockSpec((None, E, E), lambda b, l: (l, 0, 0)),       # wo
            pl.BlockSpec((None, E, 4 * E), lambda b, l: (l, 0, 0)),   # w1
            pl.BlockSpec((None, 4 * E, E), lambda b, l: (l, 0, 0)),   # w2
            pl.BlockSpec((None, 8, 4 * E), lambda b, l: (l, 0, 0)),   # packed vectors
        ],
        out_specs=pl.BlockSpec((None, S, E), lambda b, l: (b, 0, 0)),
        scratch_shapes=[pltpu.VMEM((S, E), jnp.float32),   # resident activations
                        pltpu.VMEM((S, E), jnp.float32)],  # per-head ctx assembly
        compiler_params=pltpu.CompilerParams(
            dimension_semantics=("parallel", "arbitrary"),
            vmem_limit_bytes=vmem_a),
    )(x0, params["wqkv"], params["wo"], params["w1"], params["w2"], params["vec"])

    # ---- Kernel B: ln_f + LM head, tiled over (M, Vp) ------------------------
    x_flat = hidden.reshape(M, E)
    TM = M if M <= 512 else next(t for t in (512, 256, 128, M) if M % t == 0)
    TV = Vp if Vp <= 2048 else next(t for t in (2048, 1024, 512, 256, 128) if Vp % t == 0)

    est_b = 2 * (TM * E * 4 + 2 * E * 4 + E * TV * 2 + TV * 4 + TM * TV * 2)
    vmem_b = int(min(max(2 * est_b, 32 << 20), cap))

    logits = pl.pallas_call(
        head_kernel,
        out_shape=jax.ShapeDtypeStruct((M, Vp), jnp.bfloat16),
        grid=(M // TM, Vp // TV),
        in_specs=[
            pl.BlockSpec((TM, E), lambda i, j: (i, 0)),
            pl.BlockSpec((1, E), lambda i, j: (0, 0)),
            pl.BlockSpec((1, E), lambda i, j: (0, 0)),
            pl.BlockSpec((E, TV), lambda i, j: (0, j)),
            pl.BlockSpec((1, TV), lambda i, j: (0, j)),
        ],
        out_specs=pl.BlockSpec((TM, TV), lambda i, j: (i, j)),
        compiler_params=pltpu.CompilerParams(
            dimension_semantics=("parallel", "parallel"),
            vmem_limit_bytes=vmem_b),
    )(x_flat, params["lnfw"], params["lnfb"], params["wh_t"], params["bh"])

    # Strip vocab padding + upcast in the wrapper (keeps the kernel store
    # lane-dense/unmasked and halves the HBM writeback).
    return logits[:, :V].astype(jnp.float32).reshape(B, S, V)


# --------------------------------------------------------------------------- #
# Parameters                                                                   #
# --------------------------------------------------------------------------- #
def init_params(key, vocab_size, embed_dim, num_heads, num_layers, seq_length):
    """GPT-style init: normal(std=0.02) weights, zero biases, LN weight=1/bias=0.

    Matmul weights are stacked over layers, pre-transposed to (in, out), cast
    to bf16 (MXU operands).  The 1/sqrt(dh) attention scale is folded into the
    Q projection.  The 8 small per-layer vectors are packed into one tensor.
    """
    std = 0.02
    E, V, L = embed_dim, vocab_size, num_layers
    Fd = 4 * E
    dh = E // num_heads
    Vp = ((V + 127) // 128) * 128          # lane-dense padded vocab width
    wdt = jnp.bfloat16
    ks = iter(jax.random.split(key, 8))

    def nrm(k, shape):
        return jax.random.normal(k, shape, jnp.float32) * std

    wqkv = nrm(next(ks), (L, E, 3 * E))
    scale = 1.0 / math.sqrt(dh)
    wqkv = wqkv.at[:, :, :E].multiply(scale)           # fold softmax scale into Q
    bqkv = jnp.zeros((L, 3 * E), jnp.float32).at[:, :E].multiply(scale)

    wo = nrm(next(ks), (L, E, E))
    w1 = nrm(next(ks), (L, E, Fd))
    w2 = nrm(next(ks), (L, Fd, E))
    head_w = nrm(next(ks), (E, V))

    zeros_E = jnp.zeros((L, E), jnp.float32)
    ones_E = jnp.ones((L, E), jnp.float32)
    rows = [bqkv, zeros_E, ones_E, zeros_E,            # bqkv, bo, ln1w, ln1b
            jnp.zeros((L, Fd), jnp.float32),           # b1
            zeros_E, ones_E, zeros_E]                  # b2, ln2w, ln2b
    vec = jnp.zeros((L, 8, Fd), jnp.float32)
    for r, a in enumerate(rows):
        vec = vec.at[:, r, :a.shape[-1]].set(a)

    return {
        "vocab_size": V,
        "tok_emb": nrm(next(ks), (V, E)),
        "pos_emb": nrm(next(ks), (seq_length, E)),
        "wqkv": wqkv.astype(wdt),
        "wo": wo.astype(wdt),
        "w1": w1.astype(wdt),
        "w2": w2.astype(wdt),
        "vec": vec,
        "lnfw": jnp.ones((1, E), jnp.float32),
        "lnfb": jnp.zeros((1, E), jnp.float32),
        # Head padded to a multiple of 128 output lanes; pad columns are zero
        # and are sliced off in the wrapper.
        "wh_t": jnp.zeros((E, Vp), wdt).at[:, :V].set(head_w.astype(wdt)),
        "bh": jnp.zeros((1, Vp), jnp.float32),
    }


# --------------------------------------------------------------------------- #
# Pure-JAX reference (same params, f32 math) for a loose correctness check.    #
# --------------------------------------------------------------------------- #
def reference_forward(input_ids, params, num_heads):
    B, S = input_ids.shape
    E = params["tok_emb"].shape[1]
    L = params["wqkv"].shape[0]
    V = params["vocab_size"]
    H = num_heads
    dh = E // H

    def ln(x, w, b):
        mu = x.mean(-1, keepdims=True)
        var = ((x - mu) ** 2).mean(-1, keepdims=True)
        return (x - mu) / jnp.sqrt(var + LN_EPS) * w + b

    x = (params["tok_emb"][input_ids]
         + params["pos_emb"][jnp.arange(S)][None]).astype(jnp.float32)
    vec = params["vec"]
    for l in range(L):
        wqkv = params["wqkv"][l].astype(jnp.float32)
        wo = params["wo"][l].astype(jnp.float32)
        w1 = params["w1"][l].astype(jnp.float32)
        w2 = params["w2"][l].astype(jnp.float32)
        bqkv, bo = vec[l, 0, :3 * E], vec[l, 1, :E]
        ln1w, ln1b = vec[l, 2, :E], vec[l, 3, :E]
        b1, b2 = vec[l, 4, :], vec[l, 5, :E]
        ln2w, ln2b = vec[l, 6, :E], vec[l, 7, :E]

        qkv = x @ wqkv + bqkv
        q, k, v = qkv[..., :E], qkv[..., E:2 * E], qkv[..., 2 * E:]
        q = q.reshape(B, S, H, dh).transpose(0, 2, 1, 3)
        k = k.reshape(B, S, H, dh).transpose(0, 2, 1, 3)
        v = v.reshape(B, S, H, dh).transpose(0, 2, 1, 3)
        s = jnp.einsum("bhqd,bhkd->bhqk", q, k)        # scale already folded in
        p = jax.nn.softmax(s, axis=-1)
        ctx = jnp.einsum("bhqk,bhkd->bhqd", p, v).transpose(0, 2, 1, 3).reshape(B, S, E)
        x = ln(x + ctx @ wo + bo, ln1w, ln1b)
        ff = jnp.maximum(x @ w1 + b1, 0.0) @ w2 + b2
        x = ln(x + ff, ln2w, ln2b)
    x = ln(x, params["lnfw"][0], params["lnfb"][0])
    logits = x @ params["wh_t"].astype(jnp.float32) + params["bh"][0]
    return logits[..., :V]


if __name__ == "__main__":
    # Small shapes consistent with the module's forward.
    VOCAB, EMBED, HEADS, LAYERS, SEQ, BATCH = 64, 32, 4, 2, 8, 2

    key = jax.random.PRNGKey(0)
    k_param, k_ids = jax.random.split(key)
    params = init_params(k_param, VOCAB, EMBED, HEADS, LAYERS, SEQ)
    input_ids = jax.random.randint(k_ids, (BATCH, SEQ), 0, VOCAB, dtype=jnp.int32)

    logits = mini_transformer_forward(input_ids, params, HEADS)
    logits = jax.block_until_ready(logits)

    assert logits.shape == (BATCH, SEQ, VOCAB), logits.shape
    assert bool(jnp.all(jnp.isfinite(logits)))

    # Loose tolerance: kernel uses bf16 matmul operands + approx softmax recip.
    ref = reference_forward(input_ids, params, HEADS)
    assert bool(jnp.allclose(logits, ref, atol=5e-2, rtol=5e-2)), (
        float(jnp.max(jnp.abs(logits - ref))))

    print("KERNEL_OK")
</pallas_src>

<mosaic_0001>
module attributes {stable_mosaic.version = 11 : i64} {
  func.func @encoder_layers_kernel(%arg0: i32, %arg1: i32, %arg2: memref<1x8x32xf32, #tpu.memory_space<vmem>>, %arg3: memref<1x32x96xbf16, #tpu.memory_space<vmem>>, %arg4: memref<1x32x32xbf16, #tpu.memory_space<vmem>>, %arg5: memref<1x32x128xbf16, #tpu.memory_space<vmem>>, %arg6: memref<1x128x32xbf16, #tpu.memory_space<vmem>>, %arg7: memref<1x8x128xf32, #tpu.memory_space<vmem>>, %arg8: memref<1x8x32xf32, #tpu.memory_space<vmem>>, %arg9: memref<8x32xf32, #tpu.memory_space<vmem>>, %arg10: memref<8x32xf32, #tpu.memory_space<vmem>>) attributes {dimension_semantics = [#tpu.dimension_semantics<parallel>, #tpu.dimension_semantics<arbitrary>], iteration_bounds = array<i64: 2, 2>, scalar_prefetch = 0 : i64, scratch_operands = 2 : i64, tpu.core_type = #tpu.core_type<tc>, window_params = [{transform_indices = @transform_0, window_bounds = array<i64: 1, 8, 32>}, {transform_indices = @transform_1, window_bounds = array<i64: 1, 32, 96>}, {transform_indices = @transform_2, window_bounds = array<i64: 1, 32, 32>}, {transform_indices = @transform_3, window_bounds = array<i64: 1, 32, 128>}, {transform_indices = @transform_4, window_bounds = array<i64: 1, 128, 32>}, {transform_indices = @transform_5, window_bounds = array<i64: 1, 8, 128>}, {transform_indices = @transform_6, window_bounds = array<i64: 1, 8, 32>}]} {
    %c0_i32 = arith.constant 0 : i32
    %0 = arith.cmpi eq, %arg1, %c0_i32 : i32
    %1 = arith.extui %0 : i1 to i32
    %c0_i32_0 = arith.constant 0 : i32
    %2 = arith.cmpi ne, %1, %c0_i32_0 : i32
    scf.if %2 {
      %c0_57 = arith.constant 0 : index
      %c0_58 = arith.constant 0 : index
      %c0_59 = arith.constant 0 : index
      %160 = vector.load %arg2[%c0_57, %c0_58, %c0_59] : memref<1x8x32xf32, #tpu.memory_space<vmem>>, vector<1x8x32xf32>
      %161 = vector.shape_cast %160 : vector<1x8x32xf32> to vector<8x32xf32>
      %c0_60 = arith.constant 0 : index
      %c0_61 = arith.constant 0 : index
      %162 = vector.load %arg9[%c0_60, %c0_61] : memref<8x32xf32, #tpu.memory_space<vmem>>, vector<8x32xf32>
      tpu.vector_store %arg9[%c0_60, %c0_61], %161 {strides = array<i32>} : memref<8x32xf32, #tpu.memory_space<vmem>>, vector<8x32xf32>,
    } else {
    }
    %c0 = arith.constant 0 : index
    %c0_1 = arith.constant 0 : index
    %3 = vector.load %arg9[%c0, %c0_1] : memref<8x32xf32, #tpu.memory_space<vmem>>, vector<8x32xf32>
    %c0_2 = arith.constant 0 : index
    %c0_3 = arith.constant 0 : index
    %c0_4 = arith.constant 0 : index
    %4 = vector.load %arg7[%c0_2, %c0_3, %c0_4] : memref<1x8x128xf32, #tpu.memory_space<vmem>>, vector<1x8x128xf32>
    %5 = vector.shape_cast %4 : vector<1x8x128xf32> to vector<8x128xf32>
    %6 = vector.extract_strided_slice %5 {offsets = [0, 0], sizes = [1, 96], strides = [1, 1]} : vector<8x128xf32> to vector<1x96xf32>
    %7 = vector.extract_strided_slice %5 {offsets = [1, 0], sizes = [1, 32], strides = [1, 1]} : vector<8x128xf32> to vector<1x32xf32>
    %8 = vector.extract_strided_slice %5 {offsets = [2, 0], sizes = [1, 32], strides = [1, 1]} : vector<8x128xf32> to vector<1x32xf32>
    %9 = vector.extract_strided_slice %5 {offsets = [3, 0], sizes = [1, 32], strides = [1, 1]} : vector<8x128xf32> to vector<1x32xf32>
    %10 = vector.extract_strided_slice %5 {offsets = [4, 0], sizes = [1, 128], strides = [1, 1]} : vector<8x128xf32> to vector<1x128xf32>
    %11 = vector.extract_strided_slice %5 {offsets = [5, 0], sizes = [1, 32], strides = [1, 1]} : vector<8x128xf32> to vector<1x32xf32>
    %12 = vector.extract_strided_slice %5 {offsets = [6, 0], sizes = [1, 32], strides = [1, 1]} : vector<8x128xf32> to vector<1x32xf32>
    %13 = vector.extract_strided_slice %5 {offsets = [7, 0], sizes = [1, 32], strides = [1, 1]} : vector<8x128xf32> to vector<1x32xf32>
    %14 = arith.truncf %3 : vector<8x32xf32> to vector<8x32xbf16>
    %c0_5 = arith.constant 0 : index
    %c0_6 = arith.constant 0 : index
    %c0_7 = arith.constant 0 : index
    %15 = vector.load %arg3[%c0_5, %c0_6, %c0_7] : memref<1x32x96xbf16, #tpu.memory_space<vmem>>, vector<1x32x96xbf16>
    %16 = vector.shape_cast %15 : vector<1x32x96xbf16> to vector<32x96xbf16>
    %cst = arith.constant dense<0.000000e+00> : vector<8x96xf32>
    %17 = tpu.matmul %14, %16, %cst {dimension_numbers = #tpu.dot_dimension_numbers<[1], [0], [0], [1], [0, 0, 1, 1], [], []>} : vector<8x32xbf16>, vector<32x96xbf16>, vector<8x96xf32> -> vector<8x96xf32>
    %18 = vector.broadcast %6 : vector<1x96xf32> to vector<8x96xf32>
    %19 = arith.addf %17, %18 : vector<8x96xf32>
    %20 = arith.truncf %19 : vector<8x96xf32> to vector<8x96xbf16>
    %21 = vector.extract_strided_slice %20 {offsets = [0, 0], sizes = [8, 8], strides = [1, 1]} : vector<8x96xbf16> to vector<8x8xbf16>
    %22 = vector.extract_strided_slice %20 {offsets = [0, 32], sizes = [8, 8], strides = [1, 1]} : vector<8x96xbf16> to vector<8x8xbf16>
    %23 = vector.extract_strided_slice %20 {offsets = [0, 64], sizes = [8, 8], strides = [1, 1]} : vector<8x96xbf16> to vector<8x8xbf16>
    %cst_8 = arith.constant dense<0.000000e+00> : vector<8x8xf32>
    %24 = tpu.matmul %21, %22, %cst_8 {dimension_numbers = #tpu.dot_dimension_numbers<[1], [1], [0], [0], [0, 0, 1, 0], [], []>} : vector<8x8xbf16>, vector<8x8xbf16>, vector<8x8xf32> -> vector<8x8xf32>
    %cst_9 = arith.constant dense<0xFF800000> : vector<8xf32>
    %25 = vector.multi_reduction <maximumf>, %24, %cst_9 [1] : vector<8x8xf32> to vector<8xf32>
    %26 = vector.shape_cast %25 : vector<8xf32> to vector<8x1xf32>
    %27 = vector.broadcast %26 : vector<8x1xf32> to vector<8x8xf32>
    %28 = arith.subf %24, %27 : vector<8x8xf32>
    %29 = math.exp %28 : vector<8x8xf32>
    %cst_10 = arith.constant dense<0.000000e+00> : vector<8xf32>
    %30 = vector.multi_reduction <add>, %29, %cst_10 [1] : vector<8x8xf32> to vector<8xf32>
    %31 = vector.shape_cast %30 : vector<8xf32> to vector<8x1xf32>
    %32 = tpu.reciprocal %31 {approx = true} : vector<8x1xf32> -> vector<8x1xf32>
    %33 = vector.broadcast %32 : vector<8x1xf32> to vector<8x8xf32>
    %34 = arith.mulf %29, %33 : vector<8x8xf32>
    %35 = arith.truncf %34 : vector<8x8xf32> to vector<8x8xbf16>
    %cst_11 = arith.constant dense<0.000000e+00> : vector<8x8xf32>
    %36 = tpu.matmul %35, %23, %cst_11 {dimension_numbers = #tpu.dot_dimension_numbers<[1], [0], [0], [1], [0, 0, 1, 1], [], []>} : vector<8x8xbf16>, vector<8x8xbf16>, vector<8x8xf32> -> vector<8x8xf32>
    %c0_12 = arith.constant 0 : index
    %c0_13 = arith.constant 0 : index
    %37 = vector.load %arg10[%c0_12, %c0_13] : memref<8x32xf32, #tpu.memory_space<vmem>>, vector<8x8xf32>
    tpu.vector_store %arg10[%c0_12, %c0_13], %36 {strides = array<i32>} : memref<8x32xf32, #tpu.memory_space<vmem>>, vector<8x8xf32>,
    %38 = vector.extract_strided_slice %20 {offsets = [0, 8], sizes = [8, 8], strides = [1, 1]} : vector<8x96xbf16> to vector<8x8xbf16>
    %39 = vector.extract_strided_slice %20 {offsets = [0, 40], sizes = [8, 8], strides = [1, 1]} : vector<8x96xbf16> to vector<8x8xbf16>
    %40 = vector.extract_strided_slice %20 {offsets = [0, 72], sizes = [8, 8], strides = [1, 1]} : vector<8x96xbf16> to vector<8x8xbf16>
    %cst_14 = arith.constant dense<0.000000e+00> : vector<8x8xf32>
    %41 = tpu.matmul %38, %39, %cst_14 {dimension_numbers = #tpu.dot_dimension_numbers<[1], [1], [0], [0], [0, 0, 1, 0], [], []>} : vector<8x8xbf16>, vector<8x8xbf16>, vector<8x8xf32> -> vector<8x8xf32>
    %cst_15 = arith.constant dense<0xFF800000> : vector<8xf32>
    %42 = vector.multi_reduction <maximumf>, %41, %cst_15 [1] : vector<8x8xf32> to vector<8xf32>
    %43 = vector.shape_cast %42 : vector<8xf32> to vector<8x1xf32>
    %44 = vector.broadcast %43 : vector<8x1xf32> to vector<8x8xf32>
    %45 = arith.subf %41, %44 : vector<8x8xf32>
    %46 = math.exp %45 : vector<8x8xf32>
    %cst_16 = arith.constant dense<0.000000e+00> : vector<8xf32>
    %47 = vector.multi_reduction <add>, %46, %cst_16 [1] : vector<8x8xf32> to vector<8xf32>
    %48 = vector.shape_cast %47 : vector<8xf32> to vector<8x1xf32>
    %49 = tpu.reciprocal %48 {approx = true} : vector<8x1xf32> -> vector<8x1xf32>
    %50 = vector.broadcast %49 : vector<8x1xf32> to vector<8x8xf32>
    %51 = arith.mulf %46, %50 : vector<8x8xf32>
    %52 = arith.truncf %51 : vector<8x8xf32> to vector<8x8xbf16>
    %cst_17 = arith.constant dense<0.000000e+00> : vector<8x8xf32>
    %53 = tpu.matmul %52, %40, %cst_17 {dimension_numbers = #tpu.dot_dimension_numbers<[1], [0], [0], [1], [0, 0, 1, 1], [], []>} : vector<8x8xbf16>, vector<8x8xbf16>, vector<8x8xf32> -> vector<8x8xf32>
    %c0_18 = arith.constant 0 : index
    %c8 = arith.constant 8 : index
    %54 = vector.load %arg10[%c0_18, %c8] : memref<8x32xf32, #tpu.memory_space<vmem>>, vector<8x8xf32>
    tpu.vector_store %arg10[%c0_18, %c8], %53 {strides = array<i32>} : memref<8x32xf32, #tpu.memory_space<vmem>>, vector<8x8xf32>,
    %55 = vector.extract_strided_slice %20 {offsets = [0, 16], sizes = [8, 8], strides = [1, 1]} : vector<8x96xbf16> to vector<8x8xbf16>
    %56 = vector.extract_strided_slice %20 {offsets = [0, 48], sizes = [8, 8], strides = [1, 1]} : vector<8x96xbf16> to vector<8x8xbf16>
    %57 = vector.extract_strided_slice %20 {offsets = [0, 80], sizes = [8, 8], strides = [1, 1]} : vector<8x96xbf16> to vector<8x8xbf16>
    %cst_19 = arith.constant dense<0.000000e+00> : vector<8x8xf32>
    %58 = tpu.matmul %55, %56, %cst_19 {dimension_numbers = #tpu.dot_dimension_numbers<[1], [1], [0], [0], [0, 0, 1, 0], [], []>} : vector<8x8xbf16>, vector<8x8xbf16>, vector<8x8xf32> -> vector<8x8xf32>
    %cst_20 = arith.constant dense<0xFF800000> : vector<8xf32>
    %59 = vector.multi_reduction <maximumf>, %58, %cst_20 [1] : vector<8x8xf32> to vector<8xf32>
    %60 = vector.shape_cast %59 : vector<8xf32> to vector<8x1xf32>
    %61 = vector.broadcast %60 : vector<8x1xf32> to vector<8x8xf32>
    %62 = arith.subf %58, %61 : vector<8x8xf32>
    %63 = math.exp %62 : vector<8x8xf32>
    %cst_21 = arith.constant dense<0.000000e+00> : vector<8xf32>
    %64 = vector.multi_reduction <add>, %63, %cst_21 [1] : vector<8x8xf32> to vector<8xf32>
    %65 = vector.shape_cast %64 : vector<8xf32> to vector<8x1xf32>
    %66 = tpu.reciprocal %65 {approx = true} : vector<8x1xf32> -> vector<8x1xf32>
    %67 = vector.broadcast %66 : vector<8x1xf32> to vector<8x8xf32>
    %68 = arith.mulf %63, %67 : vector<8x8xf32>
    %69 = arith.truncf %68 : vector<8x8xf32> to vector<8x8xbf16>
    %cst_22 = arith.constant dense<0.000000e+00> : vector<8x8xf32>
    %70 = tpu.matmul %69, %57, %cst_22 {dimension_numbers = #tpu.dot_dimension_numbers<[1], [0], [0], [1], [0, 0, 1, 1], [], []>} : vector<8x8xbf16>, vector<8x8xbf16>, vector<8x8xf32> -> vector<8x8xf32>
    %c0_23 = arith.constant 0 : index
    %c16 = arith.constant 16 : index
    %71 = vector.load %arg10[%c0_23, %c16] : memref<8x32xf32, #tpu.memory_space<vmem>>, vector<8x8xf32>
    tpu.vector_store %arg10[%c0_23, %c16], %70 {strides = array<i32>} : memref<8x32xf32, #tpu.memory_space<vmem>>, vector<8x8xf32>,
    %72 = vector.extract_strided_slice %20 {offsets = [0, 24], sizes = [8, 8], strides = [1, 1]} : vector<8x96xbf16> to vector<8x8xbf16>
    %73 = vector.extract_strided_slice %20 {offsets = [0, 56], sizes = [8, 8], strides = [1, 1]} : vector<8x96xbf16> to vector<8x8xbf16>
    %74 = vector.extract_strided_slice %20 {offsets = [0, 88], sizes = [8, 8], strides = [1, 1]} : vector<8x96xbf16> to vector<8x8xbf16>
    %cst_24 = arith.constant dense<0.000000e+00> : vector<8x8xf32>
    %75 = tpu.matmul %72, %73, %cst_24 {dimension_numbers = #tpu.dot_dimension_numbers<[1], [1], [0], [0], [0, 0, 1, 0], [], []>} : vector<8x8xbf16>, vector<8x8xbf16>, vector<8x8xf32> -> vector<8x8xf32>
    %cst_25 = arith.constant dense<0xFF800000> : vector<8xf32>
    %76 = vector.multi_reduction <maximumf>, %75, %cst_25 [1] : vector<8x8xf32> to vector<8xf32>
    %77 = vector.shape_cast %76 : vector<8xf32> to vector<8x1xf32>
    %78 = vector.broadcast %77 : vector<8x1xf32> to vector<8x8xf32>
    %79 = arith.subf %75, %78 : vector<8x8xf32>
    %80 = math.exp %79 : vector<8x8xf32>
    %cst_26 = arith.constant dense<0.000000e+00> : vector<8xf32>
    %81 = vector.multi_reduction <add>, %80, %cst_26 [1] : vector<8x8xf32> to vector<8xf32>
    %82 = vector.shape_cast %81 : vector<8xf32> to vector<8x1xf32>
    %83 = tpu.reciprocal %82 {approx = true} : vector<8x1xf32> -> vector<8x1xf32>
    %84 = vector.broadcast %83 : vector<8x1xf32> to vector<8x8xf32>
    %85 = arith.mulf %80, %84 : vector<8x8xf32>
    %86 = arith.truncf %85 : vector<8x8xf32> to vector<8x8xbf16>
    %cst_27 = arith.constant dense<0.000000e+00> : vector<8x8xf32>
    %87 = tpu.matmul %86, %74, %cst_27 {dimension_numbers = #tpu.dot_dimension_numbers<[1], [0], [0], [1], [0, 0, 1, 1], [], []>} : vector<8x8xbf16>, vector<8x8xbf16>, vector<8x8xf32> -> vector<8x8xf32>
    %c0_28 = arith.constant 0 : index
    %c24 = arith.constant 24 : index
    %88 = vector.load %arg10[%c0_28, %c24] : memref<8x32xf32, #tpu.memory_space<vmem>>, vector<8x8xf32>
    tpu.vector_store %arg10[%c0_28, %c24], %87 {strides = array<i32>} : memref<8x32xf32, #tpu.memory_space<vmem>>, vector<8x8xf32>,
    %c0_29 = arith.constant 0 : index
    %c0_30 = arith.constant 0 : index
    %89 = vector.load %arg10[%c0_29, %c0_30] : memref<8x32xf32, #tpu.memory_space<vmem>>, vector<8x32xf32>
    %90 = arith.truncf %89 : vector<8x32xf32> to vector<8x32xbf16>
    %c0_31 = arith.constant 0 : index
    %c0_32 = arith.constant 0 : index
    %c0_33 = arith.constant 0 : index
    %91 = vector.load %arg4[%c0_31, %c0_32, %c0_33] : memref<1x32x32xbf16, #tpu.memory_space<vmem>>, vector<1x32x32xbf16>
    %92 = vector.shape_cast %91 : vector<1x32x32xbf16> to vector<32x32xbf16>
    %cst_34 = arith.constant dense<0.000000e+00> : vector<8x32xf32>
    %93 = tpu.matmul %90, %92, %cst_34 {dimension_numbers = #tpu.dot_dimension_numbers<[1], [0], [0], [1], [0, 0, 1, 1], [], []>} : vector<8x32xbf16>, vector<32x32xbf16>, vector<8x32xf32> -> vector<8x32xf32>
    %94 = vector.broadcast %7 : vector<1x32xf32> to vector<8x32xf32>
    %95 = arith.addf %93, %94 : vector<8x32xf32>
    %96 = arith.addf %3, %95 : vector<8x32xf32>
    %cst_35 = arith.constant dense<0.000000e+00> : vector<8xf32>
    %97 = vector.multi_reduction <add>, %96, %cst_35 [1] : vector<8x32xf32> to vector<8xf32>
    %98 = vector.shape_cast %97 : vector<8xf32> to vector<8x1xf32>
    %cst_36 = arith.constant 3.200000e+01 : f32
    %99 = vector.broadcast %cst_36 : f32 to vector<8x1xf32>
    %100 = arith.divf %98, %99 : vector<8x1xf32>
    %101 = vector.broadcast %100 : vector<8x1xf32> to vector<8x32xf32>
    %102 = arith.subf %96, %101 : vector<8x32xf32>
    %103 = arith.mulf %102, %102 : vector<8x32xf32>
    %cst_37 = arith.constant dense<0.000000e+00> : vector<8xf32>
    %104 = vector.multi_reduction <add>, %103, %cst_37 [1] : vector<8x32xf32> to vector<8xf32>
    %105 = vector.shape_cast %104 : vector<8xf32> to vector<8x1xf32>
    %cst_38 = arith.constant 3.200000e+01 : f32
    %106 = vector.broadcast %cst_38 : f32 to vector<8x1xf32>
    %107 = arith.divf %105, %106 : vector<8x1xf32>
    %108 = vector.broadcast %100 : vector<8x1xf32> to vector<8x32xf32>
    %109 = arith.subf %96, %108 : vector<8x32xf32>
    %cst_39 = arith.constant 9.99999974E-6 : f32
    %110 = vector.broadcast %cst_39 : f32 to vector<8x1xf32>
    %111 = arith.addf %107, %110 : vector<8x1xf32>
    %112 = math.rsqrt %111 : vector<8x1xf32>
    %113 = vector.broadcast %112 : vector<8x1xf32> to vector<8x32xf32>
    %114 = arith.mulf %109, %113 : vector<8x32xf32>
    %115 = vector.broadcast %8 : vector<1x32xf32> to vector<8x32xf32>
    %116 = arith.mulf %114, %115 : vector<8x32xf32>
    %117 = vector.broadcast %9 : vector<1x32xf32> to vector<8x32xf32>
    %118 = arith.addf %116, %117 : vector<8x32xf32>
    %119 = arith.truncf %118 : vector<8x32xf32> to vector<8x32xbf16>
    %c0_40 = arith.constant 0 : index
    %c0_41 = arith.constant 0 : index
    %c0_42 = arith.constant 0 : index
    %120 = vector.load %arg5[%c0_40, %c0_41, %c0_42] : memref<1x32x128xbf16, #tpu.memory_space<vmem>>, vector<1x32x128xbf16>
    %121 = vector.shape_cast %120 : vector<1x32x128xbf16> to vector<32x128xbf16>
    %cst_43 = arith.constant dense<0.000000e+00> : vector<8x128xf32>
    %122 = tpu.matmul %119, %121, %cst_43 {dimension_numbers = #tpu.dot_dimension_numbers<[1], [0], [0], [1], [0, 0, 1, 1], [], []>} : vector<8x32xbf16>, vector<32x128xbf16>, vector<8x128xf32> -> vector<8x128xf32>
    %123 = vector.broadcast %10 : vector<1x128xf32> to vector<8x128xf32>
    %124 = arith.addf %122, %123 : vector<8x128xf32>
    %cst_44 = arith.constant 0.000000e+00 : f32
    %125 = vector.broadcast %cst_44 : f32 to vector<8x128xf32>
    %126 = arith.maximumf %124, %125 : vector<8x128xf32>
    %127 = arith.truncf %126 : vector<8x128xf32> to vector<8x128xbf16>
    %c0_45 = arith.constant 0 : index
    %c0_46 = arith.constant 0 : index
    %c0_47 = arith.constant 0 : index
    %128 = vector.load %arg6[%c0_45, %c0_46, %c0_47] : memref<1x128x32xbf16, #tpu.memory_space<vmem>>, vector<1x128x32xbf16>
    %129 = vector.shape_cast %128 : vector<1x128x32xbf16> to vector<128x32xbf16>
    %cst_48 = arith.constant dense<0.000000e+00> : vector<8x32xf32>
    %130 = tpu.matmul %127, %129, %cst_48 {dimension_numbers = #tpu.dot_dimension_numbers<[1], [0], [0], [1], [0, 0, 1, 1], [], []>} : vector<8x128xbf16>, vector<128x32xbf16>, vector<8x32xf32> -> vector<8x32xf32>
    %131 = vector.broadcast %11 : vector<1x32xf32> to vector<8x32xf32>
    %132 = arith.addf %130, %131 : vector<8x32xf32>
    %133 = arith.addf %118, %132 : vector<8x32xf32>
    %cst_49 = arith.constant dense<0.000000e+00> : vector<8xf32>
    %134 = vector.multi_reduction <add>, %133, %cst_49 [1] : vector<8x32xf32> to vector<8xf32>
    %135 = vector.shape_cast %134 : vector<8xf32> to vector<8x1xf32>
    %cst_50 = arith.constant 3.200000e+01 : f32
    %136 = vector.broadcast %cst_50 : f32 to vector<8x1xf32>
    %137 = arith.divf %135, %136 : vector<8x1xf32>
    %138 = vector.broadcast %137 : vector<8x1xf32> to vector<8x32xf32>
    %139 = arith.subf %133, %138 : vector<8x32xf32>
    %140 = arith.mulf %139, %139 : vector<8x32xf32>
    %cst_51 = arith.constant dense<0.000000e+00> : vector<8xf32>
    %141 = vector.multi_reduction <add>, %140, %cst_51 [1] : vector<8x32xf32> to vector<8xf32>
    %142 = vector.shape_cast %141 : vector<8xf32> to vector<8x1xf32>
    %cst_52 = arith.constant 3.200000e+01 : f32
    %143 = vector.broadcast %cst_52 : f32 to vector<8x1xf32>
    %144 = arith.divf %142, %143 : vector<8x1xf32>
    %145 = vector.broadcast %137 : vector<8x1xf32> to vector<8x32xf32>
    %146 = arith.subf %133, %145 : vector<8x32xf32>
    %cst_53 = arith.constant 9.99999974E-6 : f32
    %147 = vector.broadcast %cst_53 : f32 to vector<8x1xf32>
    %148 = arith.addf %144, %147 : vector<8x1xf32>
    %149 = math.rsqrt %148 : vector<8x1xf32>
    %150 = vector.broadcast %149 : vector<8x1xf32> to vector<8x32xf32>
    %151 = arith.mulf %146, %150 : vector<8x32xf32>
    %152 = vector.broadcast %12 : vector<1x32xf32> to vector<8x32xf32>
    %153 = arith.mulf %151, %152 : vector<8x32xf32>
    %154 = vector.broadcast %13 : vector<1x32xf32> to vector<8x32xf32>
    %155 = arith.addf %153, %154 : vector<8x32xf32>
    %c0_54 = arith.constant 0 : index
    %c0_55 = arith.constant 0 : index
    %156 = vector.load %arg9[%c0_54, %c0_55] : memref<8x32xf32, #tpu.memory_space<vmem>>, vector<8x32xf32>
    tpu.vector_store %arg9[%c0_54, %c0_55], %155 {strides = array<i32>} : memref<8x32xf32, #tpu.memory_space<vmem>>, vector<8x32xf32>,
    %c1_i32 = arith.constant 1 : i32
    %157 = arith.cmpi eq, %arg1, %c1_i32 : i32
    %158 = arith.extui %157 : i1 to i32
    %c0_i32_56 = arith.constant 0 : i32
    %159 = arith.cmpi ne, %158, %c0_i32_56 : i32
    scf.if %159 {
      %c0_57 = arith.constant 0 : index
      %c0_58 = arith.constant 0 : index
      %c0_59 = arith.constant 0 : index
      %160 = vector.load %arg8[%c0_57, %c0_58, %c0_59] : memref<1x8x32xf32, #tpu.memory_space<vmem>>, vector<1x8x32xf32>
      %161 = vector.shape_cast %160 : vector<1x8x32xf32> to vector<8x32xf32>
      %162 = vector.shape_cast %155 : vector<8x32xf32> to vector<1x8x32xf32>
      tpu.vector_store %arg8[%c0_57, %c0_58, %c0_59], %162 {strides = array<i32>} : memref<1x8x32xf32, #tpu.memory_space<vmem>>, vector<1x8x32xf32>,
    } else {
    }
    return
  }
  func.func @transform_0(%arg0: i32, %arg1: i32) -> (i32, i32, i32) {
    %c0_i32 = arith.constant 0 : i32
    %c0_i32_0 = arith.constant 0 : i32
    %c0_i32_1 = arith.constant 0 : i32
    return %arg0, %c0_i32, %c0_i32_0 : i32, i32, i32
  }
  func.func @transform_1(%arg0: i32, %arg1: i32) -> (i32, i32, i32) {
    %c0_i32 = arith.constant 0 : i32
    %c0_i32_0 = arith.constant 0 : i32
    %c0_i32_1 = arith.constant 0 : i32
    return %arg1, %c0_i32, %c0_i32_0 : i32, i32, i32
  }
  func.func @transform_2(%arg0: i32, %arg1: i32) -> (i32, i32, i32) {
    %c0_i32 = arith.constant 0 : i32
    %c0_i32_0 = arith.constant 0 : i32
    %c0_i32_1 = arith.constant 0 : i32
    return %arg1, %c0_i32, %c0_i32_0 : i32, i32, i32
  }
  func.func @transform_3(%arg0: i32, %arg1: i32) -> (i32, i32, i32) {
    %c0_i32 = arith.constant 0 : i32
    %c0_i32_0 = arith.constant 0 : i32
    %c0_i32_1 = arith.constant 0 : i32
    return %arg1, %c0_i32, %c0_i32_0 : i32, i32, i32
  }
  func.func @transform_4(%arg0: i32, %arg1: i32) -> (i32, i32, i32) {
    %c0_i32 = arith.constant 0 : i32
    %c0_i32_0 = arith.constant 0 : i32
    %c0_i32_1 = arith.constant 0 : i32
    return %arg1, %c0_i32, %c0_i32_0 : i32, i32, i32
  }
  func.func @transform_5(%arg0: i32, %arg1: i32) -> (i32, i32, i32) {
    %c0_i32 = arith.constant 0 : i32
    %c0_i32_0 = arith.constant 0 : i32
    %c0_i32_1 = arith.constant 0 : i32
    return %arg1, %c0_i32, %c0_i32_0 : i32, i32, i32
  }
  func.func @transform_6(%arg0: i32, %arg1: i32) -> (i32, i32, i32) {
    %c0_i32 = arith.constant 0 : i32
    %c0_i32_0 = arith.constant 0 : i32
    %c0_i32_1 = arith.constant 0 : i32
    return %arg0, %c0_i32, %c0_i32_0 : i32, i32, i32
  }
}

</mosaic_0001>

<bundles_post_ra>
// kernel: tpu_custom_call.1
= control target key start
LH: loop header
LB: loop body
LE: loop exit
PB: predicated region body
PF: predicated region fallthrough
CT: control target
= control target key end

     0   :  { %s2060_s0 = inlined_call_operand.vmem [shape: f32[2,8,32], index: 0, kind: input, shape index: {}]   ;;  %s2061_s1 = inlined_call_operand.vmem [shape: bf16[2,32,96], index: 1, kind: input, shape index: {}]   ;;  %s2062_s2 = inlined_call_operand.vmem [shape: bf16[2,32,32], index: 2, kind: input, shape index: {}]   ;;  %s2063_s3 = inlined_call_operand.vmem [shape: bf16[2,32,128], index: 3, kind: input, shape index: {}]   ;;  %s2064_s4 = inlined_call_operand.vmem [shape: bf16[2,128,32], index: 4, kind: input, shape index: {}]   ;;  %s2065_s5 = inlined_call_operand.vmem [shape: f32[2,8,128], index: 5, kind: input, shape index: {}]   ;;  %s2066_s6 = inlined_call_operand.hbm [shape: f32[2,8,32], index: 6, kind: output, shape index: {}]  }
   0x1   :  { %2074 = sst [smem:[#allocation15_spill]] %s2060_s0 }
   0x2   :  { %11 = vsyncpa [#allocation5], 0 }
   0x3   :  { %13 = vsyncpa [#allocation5 + $0x1], 0  ;;  %s1774_s21 = smov 0   ;;  %s1776_s22 = smov 0  }
   0x4   :  { %s1778_s23 = smov 0   ;;  %s1780_s24 = smov 0  }
   0x5   :  { %s1782_s25 = smov 0   ;;  %s1784_s26 = smov 0  }
   0x6   :  { %s1786_s27 = smov 0   ;;  %s1788_s28 = smov 0  }
   0x7 LB: > { %2075 = sst [smem:[#allocation7_spill]] %s1692_s21  ;;  %s1330_s29 = sadd.s32 4294967295, %s1720_s28   ;;  %s1720_s28 = sphi %s1788_s28, %s19_s28   ;;  %s1716_s27 = sphi %s1786_s27, %s2094_s27   ;;  %s1712_s26 = sphi %s1784_s26, %s2093_s26   ;;  %s1708_s25 = sphi %s1782_s25, %s2092_s25   ;;  %s1704_s24 = sphi %s1780_s24, %s2091_s24   ;;  %s1700_s23 = sphi %s1778_s23, %s2090_s23   ;;  %s1696_s22 = sphi %s1776_s22, %s2096_s22   ;;  %s1692_s21 = sphi %s1774_s21, %s2095_s21  }
   0x8   : > { %2076 = sst [smem:[#allocation8_spill]] %s1700_s23  ;;  %s1331_s30 = sadd.s32 4294967294, %s1720_s28  }
   0x9   : > { %2077 = sst [smem:[#allocation9_spill]] %s1712_s26  ;;  %s28_s7 = sadd.s32 1, %s1712_s26 }
   0xa   : > { %2078 = sst [smem:[#allocation10_spill]] %s1716_s27  ;;  %p29_p0 = scmp.ge.s32.totalorder %s28_s7, 2 }
   0xb   : > { %s31_s8 = sadd.s32 1, %s1716_s27  ;;  %p204_p1 = scmp.ne.s32.totalorder %s1700_s23, %s1696_s22 }
   0xc   : > { %p205_p2 = scmp.eq.s32.totalorder %s1330_s29, 3  ;;  %s2098_s7 = smov (%p29_p0, %s28_s7), 0 }
   0xd   : > { %2079 = sst [smem:[#allocation11_spill]] %s2098_s7  ;;  %s2100_s8 = smov (!%p29_p0, %s31_s8), %s1716_s27 }
   0xe   : > { %p1823_p3 = por %p205_p2, %p204_p1  ;;  %p210_p4 = scmp.ne.s32.totalorder %s1696_s22, %s1692_s21 }
   0xf   : > { %p33_p5 = scmp.ge.s32.totalorder %s2100_s8, 2  ;;  %p211_p6 = scmp.eq.s32.totalorder %s1331_s30, 3 }
  0x10   : > { %p1334_p7 = scmp.ge.s32.totalorder %s1720_s28, 1  ;;  %p275_p8 = scmp.lt.s32.totalorder %s1720_s28, 5 }
  0x11   : > { %s2102_s8 = smov (%p33_p5, %s2100_s8), 0  ;;  %p1833_p9 = por %p211_p6, %p210_p4 }
  0x12   : > { %2081 = sst [smem:[#allocation12_spill]] %s2102_s8  ;;  %p276_p10 = pnand %p1334_p7, %p275_p8 }
  0x13   : > { %s2082_s10 = scalar_select %p1833_p9, 1, 0 }
  0x14   : > { %s191_s11 = ssub.s32 %s1716_s27, %s2102_s8  ;;  %s194_s12 = sadd.s32 1, %s1700_s23 }
  0x15   : > { %2083 = sst [smem:[#allocation13_spill]] %s2082_s10  ;;  %p192_p11 = scmp.eq.s32.totalorder %s191_s11, 0 }
  0x16   : > { %279 = sbr.rel (%p276_p10) target bundleno = 2490 (0x9ba), region = 44  ;;  %s2070_s14 = sand.u32 (!%p276_p10), 1, %s1696_s22  }
  0x17   : > { %s1841_s13 = scalar_select %p192_p11, %s1700_s23, %s194_s12  }
  0x18   : > { %p328_p12 = scmp.lt.s32.totalorder (!%p276_p10), %s1708_s25, 1  ;;  %s1847_s15 = sshll.u32 (!%p276_p10), %s2070_s14, 3 }
  0x19   : > { %2084 = sst [smem:[#allocation14_spill]] %s1841_s13  ;;  %p332_p13 = scmp.lt.s32.totalorder (!%p276_p10), %s1704_s24, 1 }
  0x1a   : > { %s2085_s0 = sld [smem:[#allocation15_spill]] (!%p276_p10)  ;;  %p1346_p0 = scmp.ne.s32.totalorder (!%p276_p10), %s1704_s24, 0 }
  0x1b   : > { %s329_s16 = scalar_select %p328_p12, %s1708_s25, 1 }
  0x1c   : > { %s333_s17 = scalar_select %p332_p13, %s1704_s24, 1 }
  0x1d   : > { %s1336_s18 = sshll.u32 %s329_s16, 3 }
  0x1e   : > { %s1377_s30 = sshll.u32 %s333_s17, 4  ;;  %s1380_s16 = sshll.u32 %s333_s17, 6 }
  0x1f   : > { %s336_s8 = scalar_lea.vmem %s2061_s1, %s1377_s30  ;;  %s1861_s26 = scalar_lea.vmem %s2062_s2, %s1377_s30 }
  0x20   : > { %s331_s29 = scalar_lea.vmem %s2085_s0, %s1336_s18  ;;  %s1866_s23 = scalar_lea.vmem %s2063_s3, %s1377_s30 }
  0x21   : > { %s1871_s18 = scalar_lea.vmem %s2064_s4, %s1380_s16  ;;  %s1345_s19 = sshll.u32 %s333_s17, 3 }
  0x22   : > { %s355_s12 = scalar_lea.vmem %s2065_s5, %s1345_s19  ;;  %s327_s0 = scalar_lea.vmem [#allocation4], %s1847_s15 }
  0x23   : > { %360 = sbr.rel (%p1346_p0) target bundleno = 42 (0x2a), region = 48 }
  0x28   : > { %v361_v0 = vld [vmem:[%s331_s29] sm:$0xff]  ;;  %vm362_vm0 = vcmask 261120  }
  0x29   : > { %363 = vst.msk [vmem:[#allocation2] sm:$0xff] %vm362_vm0, %v361_v0 }
  0x2a PF: > { %v1594_v1 = vld [vmem:[%s336_s8 + $0x8] sm:$0xff]   ;;  %v1722_v2 = vmov 0.0   ;;  %v1595_v3 = vld [vmem:[%s336_s8] sm:$0xff]   ;;  %vm1723_vm1 = vmmov 0   ;;  %vm387_vm2 = vcmask 261120   ;;  %v371_v6 = vlaneseq  ;;  %s1724_s21 = smov 120  }
  0x2b   : > { %1415 = vmatprep.subr.bf16.mxu0 %v1722_v2  ;;  %1435 = vmatprep.subr.bf16.mxu1 %v1722_v2  ;;  %v1896_v9 = vld [vmem:[%s355_s12] sm:$0xff]  ;;  %s1725_s27 = smov 96   ;;  %s1726_s7 = smov 80   ;;  %vm435_vm3 = vcmask 64512   ;;  %vm499_vm4 = vcmask 1043456   ;;  %vm658_vm5 = vcmask 130112  }
  0x2c   : > { %1416 = vmatpush3.bf16.msra.mxu0 %v1594_v1  ;;  %1419 = vmatprep.mubr.msk.bf16.mxu0 %vm1723_vm1, %v1722_v2  ;;  %v1893_v7 = vshrl.u32 %v371_v6, 7  ;;  %s1727_s8 = smov 88   ;;  %s1728_s10 = smov 72   ;;  %vm774_vm6 = vcmask 195712   ;;  %vm890_vm7 = vcmask 261312  }
  0x2d   : > { %1417 = vmatprep.subr.bf16.mxu0 %v1722_v2  ;;  %1437 = vmatprep.mubr.msk.bf16.mxu1 %vm1723_vm1, %v1722_v2  ;;  %s1729_s13 = smov 112   ;;  %s1730_s14 = smov 104  }
  0x2e   : > { %v373_v8 = vsub.s32 0, %v1893_v7  ;;  %s1731_s17 = smov 56   ;;  %s1732_s29 = smov 64  }
  0x2f   : > { %s1733_s30 = smov 40   ;;  %s1734_s16 = smov 48  }
  0x30   : > { %v1882_v4 = vld [vmem:[#allocation2] sm:$0xff]  ;;  %1418 = vmatpush3.bf16.msra.mxu0 %v1595_v3  ;;  %v374_v10 = vrot.slane %v1896_v9, %v373_v8  ;;  %s1735_s19 = smov 8   ;;  %s1736_s20 = smov 16  }
  0x31   : > { %v366_v5 = vpack.c.bf16 %v1882_v4, %v1882_v4  ;;  %1423 = vmatprep.subr.bf16.mxu0 %v1722_v2  ;;  %s1737_s11 = smov 24   ;;  %p1372_p1 = scmp.ne.s32.totalorder %s1704_s24, 1 }
  0x33   : > { %1420 = vmatmul.mubr.msk.bf16.vlgmr.msra.gmra.mxu0 %vm387_vm2, %v366_v5 }
  0x34   : > { %1425 = vmatprep.mubr.msk.bf16.mxu0 %vm1723_vm1, %v1722_v2 }
  0xf3   : > { %v425_v11 = vpop.f32.mrf.mxu0 }
  0xf4   : > { %v426_v12 = vadd.f32 %v425_v11, %v374_v10 }
  0xf5   : > { %v1421_v13 = vpop.f32.mrf.mxu0 }
  0xf6   : > { %v1899_v14 = vpack.c.bf16 %v426_v12, %v426_v12 }
  0xf7   : > { %v428_v15 = vpop.f32.mrf.mxu0 }
  0xf8   : > { %544 = vrot.lane.b32.xlu1 %v1899_v14, %s1724_s21  ;;  %433 = vrot.lane.b32.xlu0 %v1899_v14, %s1725_s27 }
  0xf9   : > { %v1422_v16 = vpop.f32.mrf.mxu0 }
  0xfc   : > { %662 = vrot.lane.b32.xlu1 %v1899_v14, %s1726_s7  ;;  %546 = vrot.lane.b32.xlu0 %v1899_v14, %s1727_s8 }
 0x100   : > { %778 = vrot.lane.b32.xlu1 %v1899_v14, %s1728_s10  ;;  %660 = vrot.lane.b32.xlu0 %v1899_v14, %s1729_s13 }
 0x104   : > { %776 = vrot.lane.b32.xlu0 %v1899_v14, %s1730_s14 }
 0x16a   : > { %v434_v17 = vpop.permute.xlu0 %433  ;;  %v545_v19 = vpop.permute.xlu1 %544 }
 0x16b   : > { %v440_v18 = vsel %vm435_vm3, %v434_v17, 0 }
 0x16c   : > { %1424 = vmatpush3.bf16.xpose.msra.mxu0 %v440_v18 }
 0x16d   : > { %1429 = vmatprep.subr.bf16.mxu0 %v1722_v2 }
 0x16e   : > { %v547_v20 = vpop.permute.xlu0 %546  ;;  %v663_v22 = vpop.permute.xlu1 %662 }
 0x16f   : > { %v552_v21 = vsel %vm435_vm3, %v547_v20, 0  ;;  %v668_v23 = vsel %vm435_vm3, %v663_v22, 0 }
 0x170   : > { %1436 = vmatpush3.bf16.xpose.msra.mxu1 %v552_v21 }
 0x171   : > { %1447 = vmatprep.subr.bf16.mxu1 %v1722_v2 }
 0x172   : > { %v779_v24 = vpop.permute.xlu1 %778  ;;  %v661_v25 = vpop.permute.xlu0 %660 }
 0x173   : > { %1426 = vmatmul.mubr.msk.bf16.vlgmr.msra.gmra.mxu0 %vm435_vm3, %v1899_v14  ;;  %v784_v26 = vsel %vm435_vm3, %v779_v24, 0 }
 0x174   : > { %1431 = vmatprep.mubr.msk.bf16.mxu0 %vm1723_vm1, %v1722_v2 }
 0x176   : > { %v777_v27 = vpop.permute.xlu0 %776 }
 0x177   : > { %1438 = vmatmul.mubr.msk.bf16.vlgmr.msra.gmra.mxu1 %vm435_vm3, %v545_v19 }
 0x178   : > { %1448 = vmatpush3.bf16.xpose.msra.mxu1 %v668_v23  ;;  %1449 = vmatprep.mubr.msk.bf16.mxu1 %vm1723_vm1, %v1722_v2 }
 0x179   : > { %1459 = vmatprep.subr.bf16.mxu1 %v1722_v2 }
 0x17f   : > { %1450 = vmatmul.mubr.msk.bf16.vlgmr.msra.gmra.mxu1 %vm435_vm3, %v661_v25 }
 0x180   : > { %1460 = vmatpush3.bf16.xpose.msra.mxu1 %v784_v26  ;;  %1461 = vmatprep.mubr.msk.bf16.mxu1 %vm1723_vm1, %v1722_v2 }
 0x181   : > { %1471 = vmatprep.subr.bf16.mxu1 %v1722_v2 }
 0x187   : > { %1462 = vmatmul.mubr.msk.bf16.vlgmr.msra.gmra.mxu1 %vm435_vm3, %v777_v27 }
 0x188   : > { %1475 = vmatprep.mubr.msk.bf16.mxu1 %vm1723_vm1, %v1722_v2 }
 0x233   : > { %v476_v28 = vpop.f32.mrf.mxu0 }
 0x234   : > { %v482_v29 = vsel %vm435_vm3, %v476_v28, -inf }
 0x235   : > { %483 = vmax.xlane.f32.xlu1 %v482_v29  ;;  %v1427_v30 = vpop.f32.mrf.mxu0 }
 0x237   : > { %v479_v31 = vpop.f32.mrf.mxu0  ;;  %v588_v32 = vpop.f32.mrf.mxu1 }
 0x238   : > { %v594_v33 = vsel %vm435_vm3, %v588_v32, -inf }
 0x239   : > { %595 = vmax.xlane.f32.xlu0 %v594_v33  ;;  %v1428_v34 = vpop.f32.mrf.mxu0  ;;  %v1439_v35 = vpop.f32.mrf.mxu1 }
 0x23b   : > { %v591_v36 = vpop.f32.mrf.mxu1 }
 0x23d   : > { %v1440_v37 = vpop.f32.mrf.mxu1 }
 0x23f   : > { %v704_v38 = vpop.f32.mrf.mxu1 }
 0x240   : > { %v710_v39 = vsel %vm435_vm3, %v704_v38, -inf }
 0x241   : > { %711 = vmax.xlane.f32.xlu0 %v710_v39  ;;  %v1451_v40 = vpop.f32.mrf.mxu1 }
 0x242   : > { %v1596_v40 = vld [vmem:[%s1861_s26 + $0x8] sm:$0xff]  }
 0x243   : > { %v707_v41 = vpop.f32.mrf.mxu1  ;;  %1472 = vmatpush3.bf16.msra.mxu1 %v1596_v40 }
 0x244   : > { %1473 = vmatprep.subr.bf16.mxu1 %v1722_v2 }
 0x245   : > { %v1452_v42 = vpop.f32.mrf.mxu1 }
 0x246   : > { %v1597_v42 = vld [vmem:[%s1861_s26] sm:$0xff]  }
 0x247   : > { %v820_v43 = vpop.f32.mrf.mxu1  ;;  %1474 = vmatpush3.bf16.msra.mxu1 %v1597_v42 }
 0x248   : > { %v826_v44 = vsel %vm435_vm3, %v820_v43, -inf  ;;  %1487 = vmatprep.subr.bf16.mxu1 %v1722_v2 }
 0x249   : > { %v1463_v45 = vpop.f32.mrf.mxu1  ;;  %827 = vmax.xlane.f32.xlu1 %v826_v44 }
 0x24b   : > { %v823_v46 = vpop.f32.mrf.mxu1 }
 0x24d   : > { %v1464_v47 = vpop.f32.mrf.mxu1 }
 0x2be   : > { %v484_v48 = vpop.xlane.xlu1 %483 }
 0x2bf   : > { %v485_v49 = vsub.f32 %v476_v28, %v484_v48 }
 0x2c1   : > { %v486_v50 = vmul.f32 1.442695, %v485_v49 }
 0x2c2   : > { %v596_v51 = vpop.xlane.xlu0 %595 }
 0x2c3   : > { %1608 = vpow2.f32 %v486_v50  ;;  %v597_v52 = vsub.f32 %v588_v32, %v596_v51 }
 0x2c5   : > { %v598_v53 = vmul.f32 1.442695, %v597_v52 }
 0x2c7   : > { %1610 = vpow2.f32 %v598_v53 }
 0x2ca   : > { %v712_v54 = vpop.xlane.xlu0 %711 }
 0x2cb   : > { %v713_v55 = vsub.f32 %v704_v38, %v712_v54 }
 0x2cd   : > { %v714_v56 = vmul.f32 1.442695, %v713_v55  ;;  %v900_v55 = vsub.s32 1, %v1893_v7 }
 0x2cf   : > { %1612 = vpow2.f32 %v714_v56  ;;  %v901_v56 = vrot.slane %v1896_v9, %v900_v55  ;;  %v1172_v55 = vsub.s32 6, %v1893_v7 }
 0x2d0   : > { %v1609_v57 = vpop.eup %1608 }
 0x2d1   : > { %v488_v58 = vsel %vm435_vm3, %v1609_v57, 0.0 }
 0x2d2   : > { %489 = vadd.xlane.f32.xlu0 %v488_v58  ;;  %v828_v63 = vpop.xlane.xlu1 %827 }
 0x2d3   : > { %v829_v0 = vsub.f32 %v820_v43, %v828_v63 }
 0x2d4   : > { %v1611_v59 = vpop.eup %1610 }
 0x2d5   : > { %v600_v60 = vsel %vm435_vm3, %v1611_v59, 0.0  ;;  %v830_v1 = vmul.f32 1.442695, %v829_v0 }
 0x2d6   : > { %601 = vadd.xlane.f32.xlu1 %v600_v60 }
 0x2d7   : > { %1614 = vpow2.f32 %v830_v1 }
 0x2dc   : > { %v1613_v61 = vpop.eup %1612 }
 0x2dd   : > { %v716_v62 = vsel %vm435_vm3, %v1613_v61, 0.0 }
 0x2de   : > { %717 = vadd.xlane.f32.xlu0 %v716_v62 }
 0x2e4   : > { %v1615_v3 = vpop.eup %1614 }
 0x2e5   : > { %v832_v5 = vsel %vm435_vm3, %v1615_v3, 0.0 }
 0x2e7   : > { %606 = vrot.lane.b32.xlu1 %v1899_v14, %s1731_s17 }
 0x2f4   : > { %494 = vrot.lane.b32.xlu0 %v1899_v14, %s1732_s29 }
 0x2f8   : > { %838 = vrot.lane.b32.xlu0 %v1899_v14, %s1733_s30 }
 0x30b   : > { %833 = vadd.xlane.f32.xlu1 %v832_v5 }
 0x31c   : > { %722 = vrot.lane.b32.xlu1 %v1899_v14, %s1734_s16 }
 0x35b   : > { %v490_v6 = vpop.xlane.xlu0 %489 }
 0x35c   : > { %1616 = vrcp.f32 %v490_v6 }
 0x35f   : > { %v602_v8 = vpop.xlane.xlu1 %601 }
 0x360   : > { %1618 = vrcp.f32 %v602_v8  ;;  %v1598_v8 = vld [vmem:[%s1866_s23 + $0x8] sm:$0xff]  }
 0x363   : > { %v607_v16 = vpop.permute.xlu1 %606 }
 0x364   : > { %v612_v19 = vsel %vm499_vm4, %v607_v16, 0  ;;  %v1605_v16 = vld [vmem:[%s1871_s18 + $0x10] sm:$0xff]  }
 0x367   : > { %v718_v10 = vpop.xlane.xlu0 %717 }
 0x368   : > { %1620 = vrcp.f32 %v718_v10  ;;  %v1600_v10 = vld [vmem:[%s1871_s18 + $0x38] sm:$0xff]  }
 0x369   : > { %v1617_v11 = vpop.eup %1616 }
 0x36a   : > { %v492_v12 = vmul.f32 %v1617_v11, %v1609_v57  ;;  %v1601_v11 = vld [vmem:[%s1871_s18 + $0x30] sm:$0xff]  }
 0x36b   : > { %v495_v13 = vpop.permute.xlu0 %494 }
 0x36c   : > { %v501_v15 = vsel %vm499_vm4, %v495_v13, 0  ;;  %v493_v17 = vpack.c.bf16 %v492_v12, %v492_v12  ;;  %v1602_v12 = vld [vmem:[%s1871_s18 + $0x28] sm:$0xff]   ;;  %v1603_v13 = vld [vmem:[%s1871_s18 + $0x20] sm:$0xff]  }
 0x36d   : > { %1430 = vmatpush3.bf16.msra.mxu0 %v501_v15  ;;  %v1619_v18 = vpop.eup %1618  ;;  %v1604_v15 = vld [vmem:[%s1871_s18 + $0x18] sm:$0xff]  }
 0x36e   : > { %1441 = vmatprep.subr.bf16.mxu0 %v1722_v2  ;;  %v604_v14 = vmul.f32 %v1619_v18, %v1611_v59 }
 0x36f   : > { %v839_v26 = vpop.permute.xlu0 %838 }
 0x370   : > { %1432 = vmatmul.mubr.msk.bf16.vlgmr.msra.gmra.mxu0 %vm435_vm3, %v493_v17  ;;  %v605_v20 = vpack.c.bf16 %v604_v14, %v604_v14  ;;  %v844_v28 = vsel %vm499_vm4, %v839_v26, 0  ;;  %v974_v14 = vsub.s32 2, %v1893_v7 }
 0x371   : > { %1442 = vmatpush3.bf16.msra.mxu0 %v612_v19  ;;  %1443 = vmatprep.mubr.msk.bf16.mxu0 %vm1723_vm1, %v1722_v2 }
 0x372   : > { %1453 = vmatprep.subr.bf16.mxu0 %v1722_v2 }
 0x375   : > { %v1621_v21 = vpop.eup %1620 }
 0x376   : > { %v720_v23 = vmul.f32 %v1621_v21, %v1613_v61  ;;  %v975_v21 = vrot.slane %v1896_v9, %v974_v14 }
 0x378   : > { %1444 = vmatmul.mubr.msk.bf16.vlgmr.msra.gmra.mxu0 %vm435_vm3, %v605_v20  ;;  %v721_v27 = vpack.c.bf16 %v720_v23, %v720_v23  ;;  %v979_v20 = vsub.s32 3, %v1893_v7 }
 0x379   : > { %1455 = vmatprep.mubr.msk.bf16.mxu0 %vm1723_vm1, %v1722_v2 }
 0x394   : > { %v834_v22 = vpop.xlane.xlu1 %833 }
 0x395   : > { %1622 = vrcp.f32 %v834_v22 }
 0x398   : > { %v723_v24 = vpop.permute.xlu1 %722 }
 0x399   : > { %v728_v25 = vsel %vm499_vm4, %v723_v24, 0  ;;  %v980_v24 = vrot.slane %v1896_v9, %v979_v20 }
 0x39a   : > { %1454 = vmatpush3.bf16.msra.mxu0 %v728_v25 }
 0x39b   : > { %1465 = vmatprep.subr.bf16.mxu0 %v1722_v2 }
 0x39d   : > { %1456 = vmatmul.mubr.msk.bf16.vlgmr.msra.gmra.mxu0 %vm435_vm3, %v721_v27 }
 0x39e   : > { %1466 = vmatpush3.bf16.msra.mxu0 %v844_v28  ;;  %1467 = vmatprep.mubr.msk.bf16.mxu0 %vm1723_vm1, %v1722_v2  ;;  %v1606_v28 = vld [vmem:[%s1871_s18 + $0x8] sm:$0xff]  }
 0x39f   : > { %1479 = vmatprep.subr.bf16.mxu0 %v1722_v2 }
 0x3a2   : > { %v1623_v29 = vpop.eup %1622 }
 0x3a3   : > { %v836_v30 = vmul.f32 %v1623_v29, %v1615_v3  ;;  %v1607_v29 = vld [vmem:[%s1871_s18] sm:$0xff]  }
 0x3a5   : > { %v837_v31 = vpack.c.bf16 %v836_v30, %v836_v30  ;;  %v989_v30 = vsub.s32 4, %v1893_v7 }
 0x3a7   : > { %1468 = vmatmul.mubr.msk.bf16.vlgmr.msra.gmra.mxu0 %vm435_vm3, %v837_v31  ;;  %v990_v31 = vrot.slane %v1896_v9, %v989_v30 }
 0x3a8   : > { %1483 = vmatprep.mubr.msk.bf16.mxu0 %vm1723_vm1, %v1722_v2  ;;  %1480 = vmatpush3.bf16.msra.mxu0 %v1598_v8 }
 0x3a9   : > { %1481 = vmatprep.subr.bf16.mxu0 %v1722_v2 }
 0x430   : > { %v537_v32 = vpop.f32.mrf.mxu0 }
 0x431   : > { %543 = vst.msk [vmem:[#allocation3] sm:$0xff] %vm435_vm3, %v537_v32 }
 0x432   : > { %v1433_v33 = vpop.f32.mrf.mxu0 }
 0x434   : > { %v540_v34 = vpop.f32.mrf.mxu0 }
 0x436   : > { %v1434_v35 = vpop.f32.mrf.mxu0 }
 0x438   : > { %v648_v36 = vpop.f32.mrf.mxu0 }
 0x439   : > { %655 = vrot.lane.b32.xlu1 %v648_v36, %s1735_s19 }
 0x43a   : > { %v1445_v37 = vpop.f32.mrf.mxu0 }
 0x43c   : > { %v651_v38 = vpop.f32.mrf.mxu0 }
 0x43e   : > { %v1446_v39 = vpop.f32.mrf.mxu0 }
 0x43f   : > { %v1066_v39 = vsub.s32 5, %v1893_v7 }
 0x441   : > { %v1067_v40 = vrot.slane %v1896_v9, %v1066_v39 }
 0x45d   : > { %v764_v41 = vpop.f32.mrf.mxu0 }
 0x45e   : > { %771 = vrot.lane.b32.xlu0 %v764_v41, %s1736_s20 }
 0x45f   : > { %v1457_v43 = vpop.f32.mrf.mxu0 }
 0x461   : > { %v767_v44 = vpop.f32.mrf.mxu0 }
 0x463   : > { %v1458_v45 = vpop.f32.mrf.mxu0 }
 0x467   : > { %v880_v46 = vpop.f32.mrf.mxu0 }
 0x468   : > { %887 = vrot.lane.b32.xlu1 %v880_v46, %s1737_s11 }
 0x469   : > { %v1469_v47 = vpop.f32.mrf.mxu0 }
 0x46b   : > { %v883_v48 = vpop.f32.mrf.mxu0 }
 0x46d   : > { %v1470_v49 = vpop.f32.mrf.mxu0 }
 0x4ab   : > { %v656_v50 = vpop.permute.xlu1 %655 }
 0x4ac   : > { %659 = vst.msk [vmem:[#allocation3] sm:$0xff] %vm658_vm5, %v656_v50 }
 0x4d0   : > { %v772_v51 = vpop.permute.xlu0 %771 }
 0x4d1   : > { %775 = vst.msk [vmem:[#allocation3] sm:$0xff] %vm774_vm6, %v772_v51 }
 0x4da   : > { %v888_v52 = vpop.permute.xlu1 %887 }
 0x4db   : > { %891 = vst.msk [vmem:[#allocation3] sm:$0xff] %vm890_vm7, %v888_v52 }
 0x4e2   : > { %v892_v53 = vld [vmem:[#allocation3] sm:$0xff] }
 0x4e3   : > { %v893_v54 = vpack.c.bf16 %v892_v53, %v892_v53 }
 0x4e5   : > { %1476 = vmatmul.mubr.msk.bf16.vlgmr.msra.gmra.mxu1 %vm387_vm2, %v893_v54 }
 0x4e6   : > { %1503 = vmatprep.mubr.msk.bf16.mxu1 %vm1723_vm1, %v1722_v2  ;;  %1488 = vmatpush3.bf16.msra.mxu1 %v1600_v10 }
 0x4e7   : > { %1489 = vmatprep.subr.bf16.mxu1 %v1722_v2 }
 0x4ea   : > { %1490 = vmatpush3.bf16.msra.mxu1 %v1601_v11 }
 0x4eb   : > { %1491 = vmatprep.subr.bf16.mxu1 %v1722_v2 }
 0x4ee   : > { %1492 = vmatpush3.bf16.msra.mxu1 %v1602_v12 }
 0x4ef   : > { %1493 = vmatprep.subr.bf16.mxu1 %v1722_v2 }
 0x4f2   : > { %1494 = vmatpush3.bf16.msra.mxu1 %v1603_v13 }
 0x4f3   : > { %1495 = vmatprep.subr.bf16.mxu1 %v1722_v2 }
 0x4f6   : > { %1496 = vmatpush3.bf16.msra.mxu1 %v1604_v15 }
 0x4f7   : > { %1497 = vmatprep.subr.bf16.mxu1 %v1722_v2 }
 0x4fa   : > { %1498 = vmatpush3.bf16.msra.mxu1 %v1605_v16 }
 0x4fb   : > { %1499 = vmatprep.subr.bf16.mxu1 %v1722_v2 }
 0x4fe   : > { %1500 = vmatpush3.bf16.msra.mxu1 %v1606_v28 }
 0x4ff   : > { %1501 = vmatprep.subr.bf16.mxu1 %v1722_v2 }
 0x502   : > { %1502 = vmatpush3.bf16.msra.mxu1 %v1607_v29 }
 0x5a5   : > { %v951_v57 = vpop.f32.mrf.mxu1 }
 0x5a6   : > { %v952_v58 = vadd.f32 %v951_v57, %v901_v56  ;;  %v1177_v56 = vsub.s32 7, %v1893_v7  ;;  %v1173_v57 = vrot.slane %v1896_v9, %v1172_v55 }
 0x5a7   : > { %v1477_v59 = vpop.f32.mrf.mxu1 }
 0x5a8   : > { %v957_v60 = vadd.f32 %v952_v58, %v1882_v4  ;;  %v1599_v4 = vld [vmem:[%s1866_s23] sm:$0xff]   ;;  %v1178_v59 = vrot.slane %v1896_v9, %v1177_v56 }
 0x5a9   : > { %v954_v61 = vpop.f32.mrf.mxu1  ;;  %1482 = vmatpush3.bf16.msra.mxu0 %v1599_v4 }
 0x5aa   : > { %v958_v62 = vsel %vm387_vm2, %v957_v60, 0.0 }
 0x5ab   : > { %959 = vadd.xlane.f32.xlu0 %v958_v62  ;;  %v1478_v63 = vpop.f32.mrf.mxu1 }
 0x634   : > { %v960_v0 = vpop.xlane.xlu0 %959 }
 0x635   : > { %v962_v1 = vmul.f32 0.03125, %v960_v0 }
 0x637   : > { %v963_v3 = vsub.f32 %v957_v60, %v962_v1 }
 0x639   : > { %v964_v5 = vmul.f32 %v963_v3, %v963_v3 }
 0x63b   : > { %v965_v6 = vsel %vm387_vm2, %v964_v5, 0.0 }
 0x63c   : > { %966 = vadd.xlane.f32.xlu1 %v965_v6 }
 0x6c5   : > { %v967_v17 = vpop.xlane.xlu1 %966 }
 0x6c6   : > { %v968_v18 = vmul.f32 0.03125, %v967_v17 }
 0x6c8   : > { %v969_v19 = vadd.f32 1e-05, %v968_v18 }
 0x6ca   : > { %1624 = vrsqrt.f32 %v969_v19 }
 0x6d7   : > { %v1625_v22 = vpop.eup %1624 }
 0x6d8   : > { %v971_v23 = vmul.f32 %v1625_v22, %v963_v3 }
 0x6da   : > { %v976_v25 = vmul.f32 %v975_v21, %v971_v23 }
 0x6dc   : > { %v981_v26 = vadd.f32 %v980_v24, %v976_v25 }
 0x6de   : > { %v982_v27 = vpack.c.bf16 %v981_v26, %v981_v26 }
 0x6e0   : > { %1484 = vmatmul.mubr.msk.bf16.vlgmr.msra.gmra.mxu0 %vm387_vm2, %v982_v27 }
 0x7a0   : > { %v1040_v32 = vpop.f32.mrf.mxu0 }
 0x7a1   : > { %v1041_v33 = vadd.f32 %v1040_v32, %v990_v31 }
 0x7a2   : > { %v1485_v34 = vpop.f32.mrf.mxu0 }
 0x7a3   : > { %v1046_v35 = vmax.f32 %v1041_v33, 0.0 }
 0x7a4   : > { %v1043_v36 = vpop.f32.mrf.mxu0 }
 0x7a5   : > { %v1047_v37 = vpack.c.bf16 %v1046_v35, %v1046_v35 }
 0x7a6   : > { %v1486_v38 = vpop.f32.mrf.mxu0 }
 0x7a7   : > { %1504 = vmatmul.mubr.bf16.vlgmr.msra.gmra.mxu1 %v1047_v37 }
 0x867   : > { %v1150_v41 = vpop.f32.mrf.mxu1 }
 0x868   : > { %v1151_v2 = vadd.f32 %v1150_v41, %v1067_v40 }
 0x869   : > { %v1505_v42 = vpop.f32.mrf.mxu1 }
 0x86a   : > { %v1156_v43 = vadd.f32 %v1151_v2, %v981_v26 }
 0x86b   : > { %v1153_v44 = vpop.f32.mrf.mxu1 }
 0x86c   : > { %v1157_v45 = vsel %vm387_vm2, %v1156_v43, 0.0 }
 0x86d   : > { %1158 = vadd.xlane.f32.xlu0 %v1157_v45  ;;  %v1506_v46 = vpop.f32.mrf.mxu1 }
 0x8f6   : > { %v1159_v47 = vpop.xlane.xlu0 %1158 }
 0x8f7   : > { %v1160_v48 = vmul.f32 0.03125, %v1159_v47 }
 0x8f9   : > { %v1161_v49 = vsub.f32 %v1156_v43, %v1160_v48 }
 0x8fb   : > { %v1162_v50 = vmul.f32 %v1161_v49, %v1161_v49 }
 0x8fd   : > { %v1163_v51 = vsel %vm387_vm2, %v1162_v50, 0.0 }
 0x8fe   : > { %1164 = vadd.xlane.f32.xlu0 %v1163_v51 }
 0x987   : > { %v1165_v52 = vpop.xlane.xlu0 %1164 }
 0x988   : > { %v1166_v53 = vmul.f32 0.03125, %v1165_v52 }
 0x98a   : > { %v1167_v54 = vadd.f32 1e-05, %v1166_v53 }
 0x98c   : > { %1626 = vrsqrt.f32 %v1167_v54 }
 0x999   : > { %v1627_v58 = vpop.eup %1626 }
 0x99a   : > { %v1169_v60 = vmul.f32 %v1627_v58, %v1161_v49 }
 0x99c   : > { %v1174_v61 = vmul.f32 %v1173_v57, %v1169_v60  ;;  %1184 = sbr.rel (%p1372_p1) target bundleno = 2466 (0x9a2), region = 52 }
 0x99e   : > { %v1179_v62 = vadd.f32 %v1178_v59, %v1174_v61 }
 0x9a0   : > { %1180 = vst.msk [vmem:[#allocation2] sm:$0xff] %vm387_vm2, %v1179_v62 }
 0x9a1   : > { %1185 = vst.msk [vmem:[%s327_s0] sm:$0xff] %vm387_vm2, %v1179_v62 }
 0x9a2 PF: > { %s1374_s23 = sshll.u32 %s1708_s25, 7  ;;  %s1200_s21 = sshll.u32 %s327_s0, 4  ;;  %s1201_s21 = int_to_ptr.vmem [resolvable:$true] %s1200_s21 }
 0x9a3   : > { %s1198_s12 = scalar_lea.hbm %s2066_s6, %s1374_s23  ;;  %s2086_s27 = sand.u32 1, %s1696_s22  }
 0x9a4   : > { %s1187_s24 = scalar_lea.sflag [#allocation5], %s2086_s27  ;;  %s1628_s7 = scalar_lea.vmem %s1201_s21, 128 }
 0x9a5   : > { %p1629_p2 = scmp.ne.s32.totalorder %s1201_s21, %s1628_s7  ;;  %s1738_s8 = smov [#allocation4]  }
 0x9a6   : > { %s1632_s10 = sshll.u32 %s1738_s8, 4  ;;  %s1633_s10 = int_to_ptr.vmem [resolvable:$false] %s1632_s10 }
 0x9a7   : > { %p1630_p4 = pnand %p1629_p2, %p1823_p3  ;;  %s1634_s13 = scalar_lea.vmem %s1633_s10, 256 }
 0x9a8   : > { %p1635_p6 = scmp.lt.s32.totalorder %s1201_s21, %s1633_s10  ;;  %p1636_p7 = scmp.lt.s32.totalorder %s1634_s13, %s1628_s7 }
 0x9a9   : > { %p1631_p5 = pneg %p1630_p4 }
 0x9aa   : > { %p1637_p8 = por %p1636_p7, %p1635_p6 }
 0x9ac   : > { %p1638_p10 = pnand %p1637_p8, %p1631_p5 }
 0x9ae   : > { %1641 = shalt.err (!%p1638_p10)
}
 0x9af   : > { %s1642_s25 = scalar_lea.hbm %s1198_s12, 128  ;;  %s1646_s14 = scalar_lea.hbm %s2066_s6, 256 }
 0x9b0   : > { %p1643_p11 = scmp.ne.s32.totalorder %s1198_s12, %s1642_s25  ;;  %p1647_p0 = scmp.lt.s32.totalorder %s1198_s12, %s2066_s6 }
 0x9b1   : > { %p1648_p1 = scmp.lt.s32.totalorder %s1646_s14, %s1642_s25 }
 0x9b2   : > { %p1644_p12 = pnand %p1643_p11, %p1823_p3 }
 0x9b3   : > { %p1649_p2 = por %p1648_p1, %p1647_p0 }
 0x9b4   : > { %p1645_p13 = pneg %p1644_p12 }
 0x9b6   : > { %p1650_p4 = pnand %p1649_p2, %p1645_p13 }
 0x9b8   : > { %1653 = shalt.err (!%p1650_p4)
}
 0x9b9   : > { %1507 = dma.vmem_to_hbm [thread:$0]  (%p1823_p3), %s1201_s21, 128, %s1198_s12, %s1187_s24  }
 0x9ba PF: > { %s2087_s30 = sld [smem:[#allocation7_spill]]  ;;  %p1513_p5 = scmp.ge.s32.totalorder %s1720_s28, 2 }
 0x9bc   : > { %p1510_p6 = pnand %p1513_p5, %p1833_p9 }
 0x9be   : > { %p1511_p7 = pneg %p1510_p6 }
 0x9c0   : > { %s1212_s19 = sand.u32 1, %s2087_s30  }
 0x9c1   : > { %s1213_s20 = scalar_lea.sflag [#allocation5], %s1212_s19 }
 0x9c2   : > { %1687 = dma.done.wait (%p1511_p7), %s1213_s20, 128  }
 0x9c3   : > { %1689 = vsyncadd (%p1511_p7), %s1213_s20, 4294967168  ;;  %s19_s28 = sadd.s32 1, %s1720_s28   ;;  %s2089_s11 = sld [smem:[#allocation8_spill]] }
 0x9c4   : > { %p16_p8 = scmp.ge.s32.totalorder %s19_s28, 6   ;;  %s2090_s23 = sld [smem:[#allocation14_spill]] }
 0x9c5   : > { %s2091_s24 = sld [smem:[#allocation9_spill]]  ;;  %s2095_s21 = smov %s1696_s22 }
 0x9c6   : > { %s2092_s25 = sld [smem:[#allocation10_spill]]  ;;  %18 = sbr.rel (!%p16_p8) target bundleno = 7 (0x7), region = 102 }
 0x9c7   : > { %s2093_s26 = sld [smem:[#allocation11_spill]] }
 0x9c8   : > { %s2094_s27 = sld [smem:[#allocation12_spill]] }
 0x9c9   : > { %s2096_s22 = smov %s2089_s11 }
 0x9cb   :  { %1218 = vsyncpa [#allocation5], 1 }
 0x9cc   :  { %1220 = vsyncpa [#allocation5 + $0x1], 1 }

</bundles_post_ra>
